<compile_context>
chip_gen: v7x
topology: tpu7x:2x2x1
jax: 0.10.0
libtpu: 0.0.40
codegen_flags: <defaults>
</compile_context>

<pallas_src>
import math

import jax
import jax.numpy as jnp
from jax import lax
from jax.experimental import pallas as pl
from jax.experimental.pallas import tpu as pltpu

_INV_SQRT2 = 0.7071067811865476
_NEG_BIG = -1e30  # bias of padded class columns -> exp() underflows to exactly 0


def _cdiv(a, b):
    return (a + b - 1) // b


def _round_up(n, m):
    return _cdiv(n, m) * m


def _vmem_capacity_bytes():
    """Per-TensorCore VMEM (128 MiB v5e/v6e, 64 MiB v7x); conservative fallback."""
    try:
        return int(pltpu.get_tpu_info().vmem_capacity_bytes)
    except Exception:
        return 64 << 20


def _erf(x):
    """erf via Abramowitz & Stegun 7.1.26 (|error| < 1.5e-7).

    Uses only exp / FMAs / select, all guaranteed to lower on Mosaic.
    """
    p = jnp.float32(0.3275911)
    a1 = jnp.float32(0.254829592)
    a2 = jnp.float32(-0.284496736)
    a3 = jnp.float32(1.421413741)
    a4 = jnp.float32(-1.453152027)
    a5 = jnp.float32(1.061405429)
    ax = jnp.abs(x)
    t = 1.0 / (1.0 + p * ax)
    poly = ((((a5 * t + a4) * t + a3) * t + a2) * t + a1) * t
    y = 1.0 - poly * jnp.exp(-ax * ax)
    return jnp.where(x < 0, -y, y)


def _gelu_exact(x):
    # F.gelu default = exact erf-based GELU (erf argument uses a multiply, not a divide).
    return 0.5 * x * (1.0 + _erf(x * jnp.float32(_INV_SQRT2)))


def classification_kernel(x_ref, w1_ref, b1_ref, w2_ref, b2_ref,
                          out_ref, soft_ref, embed_ref):
    x = x_ref[...].astype(jnp.float32)                              # [TB, E]

    # ---- LayerNorm stats (eps=1e-5, biased variance); affine folded into w1/b1. ----
    mean = jnp.mean(x, axis=-1, keepdims=True)
    xc = x - mean
    var = jnp.mean(xc * xc, axis=-1, keepdims=True)
    xn = xc * lax.rsqrt(var + jnp.float32(1e-5))

    # ---- dense1 (E -> H) on the MXU (bf16 operands, f32 accumulate) + exact GELU. ----
    h = jnp.dot(xn.astype(jnp.bfloat16), w1_ref[...],
                preferred_element_type=jnp.float32) + b1_ref[...]   # [TB, H]
    h = _gelu_exact(h)
    embed_ref[...] = h.astype(embed_ref.dtype)                      # embed = gelu(x).clone()

    # ---- dense2 (H -> O_pad): padded cols have zero weights and -1e30 bias. ----
    logits = jnp.dot(h.astype(jnp.bfloat16), w2_ref[...],
                     preferred_element_type=jnp.float32) + b2_ref[...]  # [TB, O_pad]
    out_ref[...] = logits.astype(out_ref.dtype)

    # ---- softmax over classes (dim=1 of the 2-D input); padded cols exp() to 0. ----
    m = jnp.max(logits, axis=-1, keepdims=True)
    e = jnp.exp(logits - m)
    soft_ref[...] = (e / jnp.sum(e, axis=-1, keepdims=True)).astype(soft_ref.dtype)


def prepare_params(gamma, beta, w1, b1, w2, b2):
    """One-time parameter prep (outside the hot path).

    * Folds the LayerNorm affine into dense1:  diag(gamma) @ w1,  beta @ w1 + b1.
    * Casts matmul weights to bf16 for the MXU (biases stay f32).
    * Lane-pads the class axis to a multiple of 128 (zero weight columns, -1e30 bias)
      so logits/softmax stores are lane-dense and padded softmax columns are exactly 0.
    w1: [E, H] and w2: [H, O] are the transposed PyTorch nn.Linear weights.
    Returns (w1f, b1f, w2p, b2p, num_classes).
    """
    E, H = w1.shape
    O = w2.shape[1]
    O_pad = _round_up(max(O, 1), 128)

    w1f = (gamma[:, None] * w1).astype(jnp.bfloat16)
    b1f = (b1 + beta @ w1).reshape(1, H).astype(jnp.float32)

    w2p = jnp.zeros((H, O_pad), jnp.bfloat16).at[:, :O].set(w2.astype(jnp.bfloat16))
    b2p = jnp.full((1, O_pad), _NEG_BIG, jnp.float32).at[0, :O].set(b2.astype(jnp.float32))
    return w1f, b1f, w2p, b2p, O


def _choose_tb(B, E, H, O_pad, block_b, vmem_bytes):
    """Batch tile size derived from a VMEM budget, snapped to MXU-friendly multiples."""
    budget = int(vmem_bytes * 0.6)
    # Single-buffered weights/biases (bf16 weights, f32 biases).
    weight_bytes = E * H * 2 + H * 4 + H * O_pad * 2 + O_pad * 4
    # Per-batch-row bytes: double-buffered x/embed/logits/soft tiles + live f32 temps.
    per_row = (2 * E * 4 + 2 * H * 4 + 2 * 2 * O_pad * 4
               + (E + 2 * H + 2 * O_pad) * 4)
    tb = max(8, (budget - weight_bytes) // per_row)
    tb = min(tb, block_b, _round_up(B, 8))
    if B >= 8 * 256:
        # Keep >= ~8 grid steps so both v7x TensorCores see a pipelined block stream.
        tb = min(tb, _round_up(_cdiv(B, 8), 256))
    if tb >= 256:
        tb = (tb // 256) * 256         # full 256-row MXU passes on v6e/v7x
    else:
        tb = max(8, (tb // 8) * 8)     # sublane multiple
    return int(tb)


def classification_layer(x, w1f, b1f, w2p, b2p, num_classes, *,
                         block_b=512, embed_dtype=jnp.float32):
    """Returns (logits, softmax(logits), embed) like the PyTorch module's forward."""
    B, E = x.shape
    H = w1f.shape[1]
    O_pad = w2p.shape[1]

    vmem_cap = _vmem_capacity_bytes()
    TB = _choose_tb(B, E, H, O_pad, block_b, vmem_cap)
    grid = (_cdiv(B, TB),)   # ragged last block handled by Pallas (rows independent)

    # Constant index_map => DMA'd once; Buffered(1) drops the never-used second buffer.
    def resident(shape):
        return pl.BlockSpec(shape, lambda i: (0, 0), pipeline_mode=pl.Buffered(1))

    # Raise scoped VMEM above the 16/32 MiB defaults, stay under v7x's 64 MiB physical.
    vmem_limit = int(max(min(vmem_cap - (8 << 20), 100 << 20), 16 << 20))

    logits, soft, embed = pl.pallas_call(
        classification_kernel,
        out_shape=(
            jax.ShapeDtypeStruct((B, O_pad), jnp.float32),   # logits (lane-padded)
            jax.ShapeDtypeStruct((B, O_pad), jnp.float32),   # softmax (lane-padded)
            jax.ShapeDtypeStruct((B, H), embed_dtype),       # embed (gelu output)
        ),
        grid=grid,
        in_specs=[
            pl.BlockSpec((TB, E), lambda i: (i, 0)),         # x, pipelined over batch
            resident((E, H)),                                # w1 (bf16, LN affine folded)
            resident((1, H)),                                # b1 (f32)
            resident((H, O_pad)),                            # w2 (bf16, lane-padded)
            resident((1, O_pad)),                            # b2 (f32, -1e30 pad)
        ],
        out_specs=(
            pl.BlockSpec((TB, O_pad), lambda i: (i, 0)),
            pl.BlockSpec((TB, O_pad), lambda i: (i, 0)),
            pl.BlockSpec((TB, H), lambda i: (i, 0)),
        ),
        compiler_params=pltpu.CompilerParams(
            dimension_semantics=("parallel",),               # shards batch over v7x's 2 TCs
            vmem_limit_bytes=vmem_limit),
    )(x, w1f, b1f, w2p, b2p)

    if O_pad != num_classes:
        logits = logits[:, :num_classes]
        soft = soft[:, :num_classes]
    return logits, soft, embed


if __name__ == "__main__":
    # Small shapes consistent with the module: batch=8, embed_dim=32, output_dim=8 (H=E//2).
    B, E, O = 8, 32, 8
    H = E // 2

    key = jax.random.PRNGKey(0)
    kx, k1, k2, k3, k4, k5, k6 = jax.random.split(key, 7)

    x = jax.random.normal(kx, (B, E), dtype=jnp.float32)

    # Deterministic PyTorch-Linear-style init; non-trivial LN affine to exercise the fold.
    bound1 = 1.0 / math.sqrt(E)
    w1 = jax.random.uniform(k1, (E, H), minval=-bound1, maxval=bound1, dtype=jnp.float32)
    b1 = jax.random.uniform(k2, (H,), minval=-bound1, maxval=bound1, dtype=jnp.float32)
    bound2 = 1.0 / math.sqrt(H)
    w2 = jax.random.uniform(k3, (H, O), minval=-bound2, maxval=bound2, dtype=jnp.float32)
    b2 = jax.random.uniform(k4, (O,), minval=-bound2, maxval=bound2, dtype=jnp.float32)
    gamma = 1.0 + 0.1 * jax.random.normal(k5, (E,), dtype=jnp.float32)
    beta = 0.1 * jax.random.normal(k6, (E,), dtype=jnp.float32)

    w1f, b1f, w2p, b2p, ncls = prepare_params(gamma, beta, w1, b1, w2, b2)

    logits, soft, embed = classification_layer(x, w1f, b1f, w2p, b2p, ncls)
    jax.block_until_ready((logits, soft, embed))
    assert logits.shape == (B, O) and soft.shape == (B, O) and embed.shape == (B, H)

    # ---- bf16-consistent reference (same operand dtypes / folded affine as the kernel) ----
    mean = jnp.mean(x, axis=-1, keepdims=True)
    var = jnp.mean((x - mean) ** 2, axis=-1, keepdims=True)
    xn = (x - mean) * lax.rsqrt(var + 1e-5)
    h_acc = jnp.dot(xn.astype(jnp.bfloat16), w1f, preferred_element_type=jnp.float32) + b1f
    h_ref = 0.5 * h_acc * (1.0 + lax.erf(h_acc * _INV_SQRT2))
    logits_ref = jnp.dot(h_ref.astype(jnp.bfloat16), w2.astype(jnp.bfloat16),
                         preferred_element_type=jnp.float32) + b2
    soft_ref = jax.nn.softmax(logits_ref, axis=1)

    assert jnp.allclose(embed, h_ref, atol=1e-3), "embed mismatch (bf16-consistent ref)"
    assert jnp.allclose(logits, logits_ref, atol=2e-3), "logits mismatch (bf16-consistent ref)"
    assert jnp.allclose(soft, soft_ref, atol=1e-3), "softmax mismatch (bf16-consistent ref)"
    assert jnp.allclose(jnp.sum(soft, axis=1), 1.0, atol=1e-5), "softmax rows must sum to 1"

    # ---- loose check against the full-f32 PyTorch-equivalent math (semantics only) ----
    xn_f32 = (x - mean) / jnp.sqrt(var + 1e-5) * gamma + beta
    h_f32 = jax.nn.gelu(xn_f32 @ w1 + b1, approximate=False)
    logits_f32 = h_f32 @ w2 + b2
    soft_f32 = jax.nn.softmax(logits_f32, axis=1)
    assert jnp.allclose(logits, logits_f32, atol=5e-2), "logits far from f32 reference"
    assert jnp.allclose(soft, soft_f32, atol=5e-2), "softmax far from f32 reference"
    assert jnp.allclose(embed, h_f32, atol=5e-2), "embed far from f32 reference"

    print("KERNEL_OK")
</pallas_src>

<mosaic_0001>
module attributes {stable_mosaic.version = 11 : i64} {
  func.func @classification_kernel(%arg0: i32, %arg1: memref<8x32xf32, #tpu.memory_space<vmem>>, %arg2: memref<32x16xbf16, #tpu.memory_space<vmem>>, %arg3: memref<1x16xf32, #tpu.memory_space<vmem>>, %arg4: memref<16x128xbf16, #tpu.memory_space<vmem>>, %arg5: memref<1x128xf32, #tpu.memory_space<vmem>>, %arg6: memref<8x128xf32, #tpu.memory_space<vmem>>, %arg7: memref<8x128xf32, #tpu.memory_space<vmem>>, %arg8: memref<8x16xf32, #tpu.memory_space<vmem>>) attributes {dimension_semantics = [#tpu.dimension_semantics<parallel>], iteration_bounds = array<i64: 1>, scalar_prefetch = 0 : i64, scratch_operands = 0 : i64, tpu.core_type = #tpu.core_type<tc>, window_params = [{transform_indices = @transform_0, window_bounds = array<i64: 8, 32>}, {pipeline_mode = #tpu.pipeline_mode<synchronous>, transform_indices = @transform_1, window_bounds = array<i64: 32, 16>}, {pipeline_mode = #tpu.pipeline_mode<synchronous>, transform_indices = @transform_2, window_bounds = array<i64: 1, 16>}, {pipeline_mode = #tpu.pipeline_mode<synchronous>, transform_indices = @transform_3, window_bounds = array<i64: 16, 128>}, {pipeline_mode = #tpu.pipeline_mode<synchronous>, transform_indices = @transform_4, window_bounds = array<i64: 1, 128>}, {transform_indices = @transform_5, window_bounds = array<i64: 8, 128>}, {transform_indices = @transform_6, window_bounds = array<i64: 8, 128>}, {transform_indices = @transform_7, window_bounds = array<i64: 8, 16>}]} {
    %c0 = arith.constant 0 : index
    %c0_0 = arith.constant 0 : index
    %0 = vector.load %arg1[%c0, %c0_0] : memref<8x32xf32, #tpu.memory_space<vmem>>, vector<8x32xf32>
    %cst = arith.constant dense<0.000000e+00> : vector<8xf32>
    %1 = vector.multi_reduction <add>, %0, %cst [1] : vector<8x32xf32> to vector<8xf32>
    %2 = vector.shape_cast %1 : vector<8xf32> to vector<8x1xf32>
    %cst_1 = arith.constant 3.200000e+01 : f32
    %3 = vector.broadcast %cst_1 : f32 to vector<8x1xf32>
    %4 = arith.divf %2, %3 : vector<8x1xf32>
    %5 = vector.broadcast %4 : vector<8x1xf32> to vector<8x32xf32>
    %6 = arith.subf %0, %5 : vector<8x32xf32>
    %7 = arith.mulf %6, %6 : vector<8x32xf32>
    %cst_2 = arith.constant dense<0.000000e+00> : vector<8xf32>
    %8 = vector.multi_reduction <add>, %7, %cst_2 [1] : vector<8x32xf32> to vector<8xf32>
    %9 = vector.shape_cast %8 : vector<8xf32> to vector<8x1xf32>
    %cst_3 = arith.constant 3.200000e+01 : f32
    %10 = vector.broadcast %cst_3 : f32 to vector<8x1xf32>
    %11 = arith.divf %9, %10 : vector<8x1xf32>
    %cst_4 = arith.constant 9.99999974E-6 : f32
    %12 = vector.broadcast %cst_4 : f32 to vector<8x1xf32>
    %13 = arith.addf %11, %12 : vector<8x1xf32>
    %14 = math.rsqrt %13 : vector<8x1xf32>
    %15 = vector.broadcast %14 : vector<8x1xf32> to vector<8x32xf32>
    %16 = arith.mulf %6, %15 : vector<8x32xf32>
    %17 = arith.truncf %16 : vector<8x32xf32> to vector<8x32xbf16>
    %c0_5 = arith.constant 0 : index
    %c0_6 = arith.constant 0 : index
    %18 = vector.load %arg2[%c0_5, %c0_6] : memref<32x16xbf16, #tpu.memory_space<vmem>>, vector<32x16xbf16>
    %cst_7 = arith.constant dense<0.000000e+00> : vector<8x16xf32>
    %19 = tpu.matmul %17, %18, %cst_7 {dimension_numbers = #tpu.dot_dimension_numbers<[1], [0], [0], [1], [0, 0, 1, 1], [], []>} : vector<8x32xbf16>, vector<32x16xbf16>, vector<8x16xf32> -> vector<8x16xf32>
    %c0_8 = arith.constant 0 : index
    %c0_9 = arith.constant 0 : index
    %20 = vector.load %arg3[%c0_8, %c0_9] : memref<1x16xf32, #tpu.memory_space<vmem>>, vector<1x16xf32>
    %21 = vector.broadcast %20 : vector<1x16xf32> to vector<8x16xf32>
    %22 = arith.addf %19, %21 : vector<8x16xf32>
    %cst_10 = arith.constant 5.000000e-01 : f32
    %23 = vector.broadcast %cst_10 : f32 to vector<8x16xf32>
    %24 = arith.mulf %23, %22 : vector<8x16xf32>
    %cst_11 = arith.constant 0.707106769 : f32
    %25 = vector.broadcast %cst_11 : f32 to vector<8x16xf32>
    %26 = arith.mulf %22, %25 : vector<8x16xf32>
    %27 = math.absf %26 : vector<8x16xf32>
    %cst_12 = arith.constant 0.327591091 : f32
    %28 = vector.broadcast %cst_12 : f32 to vector<8x16xf32>
    %29 = arith.mulf %28, %27 : vector<8x16xf32>
    %cst_13 = arith.constant 1.000000e+00 : f32
    %30 = vector.broadcast %cst_13 : f32 to vector<8x16xf32>
    %31 = arith.addf %30, %29 : vector<8x16xf32>
    %cst_14 = arith.constant 1.000000e+00 : f32
    %32 = vector.broadcast %cst_14 : f32 to vector<8x16xf32>
    %33 = arith.divf %32, %31 : vector<8x16xf32>
    %cst_15 = arith.constant 1.06140542 : f32
    %34 = vector.broadcast %cst_15 : f32 to vector<8x16xf32>
    %35 = arith.mulf %34, %33 : vector<8x16xf32>
    %cst_16 = arith.constant -1.45315206 : f32
    %36 = vector.broadcast %cst_16 : f32 to vector<8x16xf32>
    %37 = arith.addf %35, %36 : vector<8x16xf32>
    %38 = arith.mulf %37, %33 : vector<8x16xf32>
    %cst_17 = arith.constant 1.42141378 : f32
    %39 = vector.broadcast %cst_17 : f32 to vector<8x16xf32>
    %40 = arith.addf %38, %39 : vector<8x16xf32>
    %41 = arith.mulf %40, %33 : vector<8x16xf32>
    %cst_18 = arith.constant -0.284496725 : f32
    %42 = vector.broadcast %cst_18 : f32 to vector<8x16xf32>
    %43 = arith.addf %41, %42 : vector<8x16xf32>
    %44 = arith.mulf %43, %33 : vector<8x16xf32>
    %cst_19 = arith.constant 0.254829586 : f32
    %45 = vector.broadcast %cst_19 : f32 to vector<8x16xf32>
    %46 = arith.addf %44, %45 : vector<8x16xf32>
    %47 = arith.mulf %46, %33 : vector<8x16xf32>
    %cst_20 = arith.constant 0.000000e+00 : f32
    %48 = vector.broadcast %cst_20 : f32 to vector<8x16xf32>
    %49 = arith.subf %48, %27 : vector<8x16xf32>
    %50 = arith.mulf %49, %27 : vector<8x16xf32>
    %51 = math.exp %50 : vector<8x16xf32>
    %52 = arith.mulf %47, %51 : vector<8x16xf32>
    %cst_21 = arith.constant 1.000000e+00 : f32
    %53 = vector.broadcast %cst_21 : f32 to vector<8x16xf32>
    %54 = arith.subf %53, %52 : vector<8x16xf32>
    %cst_22 = arith.constant 0.000000e+00 : f32
    %55 = vector.broadcast %cst_22 : f32 to vector<8x16xf32>
    %56 = arith.cmpf olt, %26, %55 : vector<8x16xf32>
    %cst_23 = arith.constant 0.000000e+00 : f32
    %57 = vector.broadcast %cst_23 : f32 to vector<8x16xf32>
    %58 = arith.subf %57, %54 : vector<8x16xf32>
    %59 = arith.select %56, %58, %54 : vector<8x16xi1>, vector<8x16xf32>
    %cst_24 = arith.constant 1.000000e+00 : f32
    %60 = vector.broadcast %cst_24 : f32 to vector<8x16xf32>
    %61 = arith.addf %60, %59 : vector<8x16xf32>
    %62 = arith.mulf %24, %61 : vector<8x16xf32>
    %c0_25 = arith.constant 0 : index
    %c0_26 = arith.constant 0 : index
    %63 = vector.load %arg8[%c0_25, %c0_26] : memref<8x16xf32, #tpu.memory_space<vmem>>, vector<8x16xf32>
    tpu.vector_store %arg8[%c0_25, %c0_26], %62 {strides = array<i32>} : memref<8x16xf32, #tpu.memory_space<vmem>>, vector<8x16xf32>,
    %64 = arith.truncf %62 : vector<8x16xf32> to vector<8x16xbf16>
    %c0_27 = arith.constant 0 : index
    %c0_28 = arith.constant 0 : index
    %65 = vector.load %arg4[%c0_27, %c0_28] : memref<16x128xbf16, #tpu.memory_space<vmem>>, vector<16x128xbf16>
    %cst_29 = arith.constant dense<0.000000e+00> : vector<8x128xf32>
    %66 = tpu.matmul %64, %65, %cst_29 {dimension_numbers = #tpu.dot_dimension_numbers<[1], [0], [0], [1], [0, 0, 1, 1], [], []>} : vector<8x16xbf16>, vector<16x128xbf16>, vector<8x128xf32> -> vector<8x128xf32>
    %c0_30 = arith.constant 0 : index
    %c0_31 = arith.constant 0 : index
    %67 = vector.load %arg5[%c0_30, %c0_31] : memref<1x128xf32, #tpu.memory_space<vmem>>, vector<1x128xf32>
    %68 = vector.broadcast %67 : vector<1x128xf32> to vector<8x128xf32>
    %69 = arith.addf %66, %68 : vector<8x128xf32>
    %c0_32 = arith.constant 0 : index
    %c0_33 = arith.constant 0 : index
    %70 = vector.load %arg6[%c0_32, %c0_33] : memref<8x128xf32, #tpu.memory_space<vmem>>, vector<8x128xf32>
    tpu.vector_store %arg6[%c0_32, %c0_33], %69 {strides = array<i32>} : memref<8x128xf32, #tpu.memory_space<vmem>>, vector<8x128xf32>,
    %cst_34 = arith.constant dense<0xFF800000> : vector<8xf32>
    %71 = vector.multi_reduction <maximumf>, %69, %cst_34 [1] : vector<8x128xf32> to vector<8xf32>
    %72 = vector.shape_cast %71 : vector<8xf32> to vector<8x1xf32>
    %73 = vector.broadcast %72 : vector<8x1xf32> to vector<8x128xf32>
    %74 = arith.subf %69, %73 : vector<8x128xf32>
    %75 = math.exp %74 : vector<8x128xf32>
    %cst_35 = arith.constant dense<0.000000e+00> : vector<8xf32>
    %76 = vector.multi_reduction <add>, %75, %cst_35 [1] : vector<8x128xf32> to vector<8xf32>
    %77 = vector.shape_cast %76 : vector<8xf32> to vector<8x1xf32>
    %78 = vector.broadcast %77 : vector<8x1xf32> to vector<8x128xf32>
    %79 = arith.divf %75, %78 : vector<8x128xf32>
    %c0_36 = arith.constant 0 : index
    %c0_37 = arith.constant 0 : index
    %80 = vector.load %arg7[%c0_36, %c0_37] : memref<8x128xf32, #tpu.memory_space<vmem>>, vector<8x128xf32>
    tpu.vector_store %arg7[%c0_36, %c0_37], %79 {strides = array<i32>} : memref<8x128xf32, #tpu.memory_space<vmem>>, vector<8x128xf32>,
    return
  }
  func.func @transform_0(%arg0: i32) -> (i32, i32) {
    %c0_i32 = arith.constant 0 : i32
    %c0_i32_0 = arith.constant 0 : i32
    return %arg0, %c0_i32 : i32, i32
  }
  func.func @transform_1(%arg0: i32) -> (i32, i32) {
    %c0_i32 = arith.constant 0 : i32
    %c0_i32_0 = arith.constant 0 : i32
    %c0_i32_1 = arith.constant 0 : i32
    return %c0_i32, %c0_i32_0 : i32, i32
  }
  func.func @transform_2(%arg0: i32) -> (i32, i32) {
    %c0_i32 = arith.constant 0 : i32
    %c0_i32_0 = arith.constant 0 : i32
    %c0_i32_1 = arith.constant 0 : i32
    return %c0_i32, %c0_i32_0 : i32, i32
  }
  func.func @transform_3(%arg0: i32) -> (i32, i32) {
    %c0_i32 = arith.constant 0 : i32
    %c0_i32_0 = arith.constant 0 : i32
    %c0_i32_1 = arith.constant 0 : i32
    return %c0_i32, %c0_i32_0 : i32, i32
  }
  func.func @transform_4(%arg0: i32) -> (i32, i32) {
    %c0_i32 = arith.constant 0 : i32
    %c0_i32_0 = arith.constant 0 : i32
    %c0_i32_1 = arith.constant 0 : i32
    return %c0_i32, %c0_i32_0 : i32, i32
  }
  func.func @transform_5(%arg0: i32) -> (i32, i32) {
    %c0_i32 = arith.constant 0 : i32
    %c0_i32_0 = arith.constant 0 : i32
    return %arg0, %c0_i32 : i32, i32
  }
  func.func @transform_6(%arg0: i32) -> (i32, i32) {
    %c0_i32 = arith.constant 0 : i32
    %c0_i32_0 = arith.constant 0 : i32
    return %arg0, %c0_i32 : i32, i32
  }
  func.func @transform_7(%arg0: i32) -> (i32, i32) {
    %c0_i32 = arith.constant 0 : i32
    %c0_i32_0 = arith.constant 0 : i32
    return %arg0, %c0_i32 : i32, i32
  }
}

</mosaic_0001>

<bundles_post_ra>
// kernel: tpu_custom_call.1
= control target key start
LH: loop header
LB: loop body
LE: loop exit
PB: predicated region body
PF: predicated region fallthrough
CT: control target
= control target key end

     0   :  { %13 = vsyncpa [#allocation3], 0  ;;  %vm27_vm0 = vcmask 261120   ;;  %s465_s0 = inlined_call_operand.vmem [shape: f32[8,32], index: 0, kind: input, shape index: {}]   ;;  %s466_s1 = inlined_call_operand.vmem [shape: bf16[32,16], index: 1, kind: input, shape index: {}]   ;;  %s467_s2 = inlined_call_operand.vmem [shape: f32[1,16], index: 2, kind: input, shape index: {}]   ;;  %s468_s3 = inlined_call_operand.vmem [shape: bf16[16,128], index: 3, kind: input, shape index: {}]   ;;  %s469_s4 = inlined_call_operand.vmem [shape: f32[1,128], index: 4, kind: input, shape index: {}]   ;;  %s470_s5 = inlined_call_operand.hbm [shape: f32[8,128], index: 5, kind: output, shape index: {0}]   ;;  %s471_s6 = inlined_call_operand.hbm [shape: f32[8,128], index: 6, kind: output, shape index: {1}]   ;;  %s472_s7 = inlined_call_operand.hbm [shape: f32[8,16], index: 7, kind: output, shape index: {2}]  }
   0x1   :  { %v26_v0 = vld [vmem:[%s465_s0] sm:$0xff] }
   0x2   :  { %v28_v1 = vsel %vm27_vm0, %v26_v0, 0.0 }
   0x3   :  { %29 = vadd.xlane.f32.xlu0 %v28_v1 }
   0x4   :  { %14 = vsyncpa [#allocation5], 0  ;;  %v280_v7 = vld [vmem:[%s466_s1] sm:$0xff]   ;;  %v363_v8 = vmov 0.0   ;;  %vm364_vm1 = vmmov 0   ;;  %v281_v9 = vld [vmem:[%s466_s1 + $0x8] sm:$0xff]  }
   0x5   :  { %261 = vmatprep.subr.bf16.mxu0 %v363_v8  ;;  %265 = vmatprep.mubr.msk.bf16.mxu0 %vm364_vm1, %v363_v8  ;;  %v282_v16 = vld [vmem:[%s468_s3] sm:$0xff]   ;;  %vm136_vm3 = vcmask 130048   ;;  %s365_s9 = smov [#allocation2]  }
   0x6   :  { %262 = vmatpush3.bf16.msra.mxu0 %v280_v7  ;;  %269 = vmatprep.subr.bf16.mxu1 %v363_v8  ;;  %v249_v17 = vld [vmem:[%s467_s2] ss:$0 sm:$0xff]  ;;  %s214_s10 = sshll.u32 %s365_s9, 4  ;;  %s215_s10 = int_to_ptr.vmem [resolvable:$true] %s214_s10 }
   0x7   :  { %263 = vmatprep.subr.bf16.mxu0 %v363_v8  ;;  %271 = vmatprep.mubr.msk.bf16.mxu1 %vm364_vm1, %v363_v8  ;;  %v253_v49 = vld [vmem:[%s469_s4] ss:$0 sm:$0xff]  ;;  %s293_s11 = scalar_lea.vmem %s215_s10, 128  ;;  %p298_p1 = scmp.lt.s32.totalorder %s215_s10, %s215_s10 }
   0x8   :  { %270 = vmatpush3.bf16.msra.mxu1 %v282_v16  ;;  %p294_p0 = scmp.ne.s32.totalorder %s215_s10, %s293_s11  ;;  %p299_p2 = scmp.lt.s32.totalorder %s293_s11, %s293_s11 }
   0xa   :  { %264 = vmatpush3.bf16.msra.mxu0 %v281_v9  ;;  %p300_p3 = por %p299_p2, %p298_p1 }
   0xc   :  { %p301_p4 = pnand %p300_p3, %p294_p0 }
  0x90   :  { %v30_v2 = vpop.xlane.xlu0 %29 }
  0x91   :  { %v32_v3 = vmul.f32 0.03125, %v30_v2 }
  0x93   :  { %v33_v4 = vsub.f32 %v26_v0, %v32_v3 }
  0x95   :  { %v34_v5 = vmul.f32 %v33_v4, %v33_v4 }
  0x97   :  { %v35_v6 = vsel %vm27_vm0, %v34_v5, 0.0 }
  0x98   :  { %36 = vadd.xlane.f32.xlu0 %v35_v6 }
 0x125   :  { %v37_v10 = vpop.xlane.xlu0 %36 }
 0x126   :  { %v38_v11 = vmul.f32 0.03125, %v37_v10 }
 0x128   :  { %v39_v12 = vadd.f32 1e-05, %v38_v11 }
 0x12a   :  { %283 = vrsqrt.f32 %v39_v12 }
 0x134   :  { %v284_v13 = vpop.eup %283 }
 0x135   :  { %v41_v14 = vmul.f32 %v284_v13, %v33_v4 }
 0x137   :  { %v42_v15 = vpack.c.bf16 %v41_v14, %v41_v14 }
 0x139   :  { %266 = vmatmul.mubr.msk.bf16.vlgmr.msra.gmra.mrb[0].mxu0 %vm27_vm0, %v42_v15 }
 0x20c   :  { %v103_v18 = vpop.f32.mrb[0].mxu0 }
 0x20d   :  { %v104_v19 = vadd.f32 %v249_v17, %v103_v18  ;;  %v267_v20 = vpop.f32.mrb[1].mxu0 }
 0x20e   :  { %v106_v21 = vpop.f32.mrb[2].mxu0 }
 0x20f   :  { %v110_v22 = vmul.f32 0.70710677, %v104_v19  ;;  %v268_v23 = vpop.f32.mrb[3].mxu0  ;;  %v109_v45 = vmul.f32 0.5, %v104_v19 }
 0x211   :  { %v111_v24 = vand.u32 2147483647, %v110_v22  ;;  %vm131_vm2 = vcmp.lt.f32.partialorder %v110_v22, 0.0 }
 0x213   :  { %v112_v25 = vmul.f32 0.3275911, %v111_v24  ;;  %v125_v27 = vsub.f32 0.0, %v111_v24 }
 0x215   :  { %v113_v26 = vadd.f32 1.0, %v112_v25  ;;  %v126_v29 = vmul.f32 %v125_v27, %v111_v24 }
 0x217   :  { %285 = vrcp.f32 %v113_v26  ;;  %v127_v32 = vmul.f32 1.442695, %v126_v29 }
 0x219   :  { %287 = vpow2.f32 %v127_v32 }
 0x221   :  { %v286_v28 = vpop.eup %285 }
 0x222   :  { %v116_v30 = vmul.f32 1.0614054, %v286_v28 }
 0x223   :  { %v288_v40 = vpop.eup %287 }
 0x224   :  { %v117_v31 = vadd.f32 -1.4531521, %v116_v30 }
 0x226   :  { %v118_v33 = vmul.f32 %v286_v28, %v117_v31 }
 0x228   :  { %v119_v34 = vadd.f32 1.4214138, %v118_v33 }
 0x22a   :  { %v120_v35 = vmul.f32 %v286_v28, %v119_v34 }
 0x22c   :  { %v121_v36 = vadd.f32 -0.28449672, %v120_v35 }
 0x22e   :  { %v122_v37 = vmul.f32 %v286_v28, %v121_v36 }
 0x230   :  { %v123_v38 = vadd.f32 0.2548296, %v122_v37 }
 0x232   :  { %v124_v39 = vmul.f32 %v286_v28, %v123_v38 }
 0x234   :  { %v129_v41 = vmul.f32 %v288_v40, %v124_v39 }
 0x236   :  { %v130_v42 = vsub.f32 1.0, %v129_v41 }
 0x238   :  { %v132_v43 = vsub.f32 0.0, %v130_v42 }
 0x23a   :  { %v133_v44 = vsel %vm131_vm2, %v132_v43, %v130_v42 }
 0x23b   :  { %v134_v46 = vadd.f32 1.0, %v133_v44 }
 0x23d   :  { %v135_v47 = vmul.f32 %v134_v46, %v109_v45 }
 0x23f   :  { %v138_v48 = vpack.c.bf16 %v135_v47, %v135_v47  ;;  %137 = vst.msk [vmem:[#allocation6] sm:$0xff] %vm136_vm3, %v135_v47 }
 0x241   :  { %272 = vmatmul.mubr.msk.bf16.vlgmr.msra.gmra.mrb[0].mxu1 %vm136_vm3, %v138_v48 }
 0x314   :  { %v191_v50 = vpop.f32.mrb[0].mxu1 }
 0x315   :  { %v192_v51 = vadd.f32 %v253_v49, %v191_v50  ;;  %v273_v52 = vpop.f32.mrb[1].mxu1 }
 0x316   :  { %v194_v53 = vpop.f32.mrb[2].mxu1 }
 0x317   :  { %197 = vst [vmem:[#allocation2] sm:$0xff] %v192_v51  ;;  %198 = vmax.xlane.f32.xlu1 %v192_v51  ;;  %v274_v54 = vpop.f32.mrb[3].mxu1 }
 0x3a4   :  { %v199_v55 = vpop.xlane.xlu1 %198 }
 0x3a5   :  { %v200_v56 = vsub.f32 %v192_v51, %v199_v55 }
 0x3a7   :  { %v201_v57 = vmul.f32 1.442695, %v200_v56 }
 0x3a9   :  { %289 = vpow2.f32 %v201_v57 }
 0x3b3   :  { %v290_v58 = vpop.eup %289 }
 0x3b4   :  { %203 = vadd.xlane.f32.xlu1 %v290_v58 }
 0x3b5   :  { %304 = shalt.err (!%p301_p4)
}
 0x3b6   :  { %s305_s13 = scalar_lea.hbm %s470_s5, 128 }
 0x3b7   :  { %p306_p5 = scmp.ne.s32.totalorder %s470_s5, %s305_s13  ;;  %p309_p6 = scmp.lt.u32.totalorder %s305_s13, %s470_s5 }
 0x3b9   :  { %p311_p7 = pnand %p309_p6, %p306_p5 }
 0x3bb   :  { %314 = shalt.err (!%p311_p7)
}
 0x3bc   :  { %217 = dma.vmem_to_hbm [thread:$0]  %s215_s10, 128, %s470_s5, [#allocation3]  }
 0x3bd   :  { %s366_s20 = smov [#allocation4]   ;;  %s367_s22 = smov [#allocation6]  }
 0x3be   :  { %s224_s21 = sshll.u32 %s366_s20, 4  ;;  %s234_s23 = sshll.u32 %s367_s22, 4  ;;  %s225_s21 = int_to_ptr.vmem [resolvable:$true] %s224_s21  ;;  %s235_s23 = int_to_ptr.vmem [resolvable:$true] %s234_s23 }
 0x3bf   :  { %s315_s24 = scalar_lea.vmem %s225_s21, 128  ;;  %p320_p9 = scmp.lt.s32.totalorder %s225_s21, %s225_s21 }
 0x3c0   :  { %p316_p8 = scmp.ne.s32.totalorder %s225_s21, %s315_s24  ;;  %p321_p10 = scmp.lt.s32.totalorder %s315_s24, %s315_s24 }
 0x3c2   :  { %p322_p11 = por %p321_p10, %p320_p9 }
 0x3c4   :  { %p323_p12 = pnand %p322_p11, %p316_p8 }
 0x441   :  { %v204_v59 = vpop.xlane.xlu1 %203 }
 0x442   :  { %291 = vrcp.f32 %v204_v59 }
 0x44c   :  { %v292_v60 = vpop.eup %291 }
 0x44d   :  { %v206_v61 = vmul.f32 %v292_v60, %v290_v58 }
 0x44f   :  { %207 = vst [vmem:[#allocation4] sm:$0xff] %v206_v61 }
 0x450   :  { %326 = shalt.err (!%p323_p12)
}
 0x451   :  { %s327_s26 = scalar_lea.hbm %s471_s6, 128 }
 0x452   :  { %p328_p13 = scmp.ne.s32.totalorder %s471_s6, %s327_s26  ;;  %p331_p0 = scmp.lt.u32.totalorder %s327_s26, %s471_s6 }
 0x454   :  { %p333_p1 = pnand %p331_p0, %p328_p13 }
 0x456   :  { %336 = shalt.err (!%p333_p1)
}
 0x457   :  { %227 = dma.vmem_to_hbm [thread:$0]  %s225_s21, 128, %s471_s6, [#allocation5]  }
 0x458   :  { %s337_s1 = scalar_lea.vmem %s235_s23, 128  ;;  %p342_p3 = scmp.lt.s32.totalorder %s235_s23, %s235_s23 }
 0x459   :  { %p338_p2 = scmp.ne.s32.totalorder %s235_s23, %s337_s1  ;;  %p343_p4 = scmp.lt.s32.totalorder %s337_s1, %s337_s1 }
 0x45b   :  { %p344_p5 = por %p343_p4, %p342_p3 }
 0x45d   :  { %p345_p6 = pnand %p344_p5, %p338_p2 }
 0x45f   :  { %348 = shalt.err (!%p345_p6)
}
 0x460   :  { %s349_s9 = scalar_lea.hbm %s472_s7, 128 }
 0x461   :  { %p350_p7 = scmp.ne.s32.totalorder %s472_s7, %s349_s9  ;;  %p353_p8 = scmp.lt.u32.totalorder %s349_s9, %s472_s7 }
 0x463   :  { %p355_p9 = pnand %p353_p8, %p350_p7 }
 0x465   :  { %358 = shalt.err (!%p355_p9)
}
 0x466   :  { %237 = dma.vmem_to_hbm [thread:$0]  %s235_s23, 128, %s472_s7, [#allocation5]  }
 0x467   :  { %359 = dma.done.wait [#allocation3], 128  }
 0x468   :  { %360 = vsyncadd [#allocation3], 4294967168 }
 0x469   :  { %361 = dma.done.wait [#allocation5], 256  }
 0x46a   :  { %362 = vsyncadd [#allocation5], 4294967040 }
 0x46b   :  { %247 = vsyncpa [#allocation3], 1 }
 0x46c   :  { %248 = vsyncpa [#allocation5], 1 }

</bundles_post_ra>
